<compile_context>
chip_gen: v6e
topology: v6e:2x2x1
jax: 0.10.0
libtpu: 0.0.40
codegen_flags: <defaults>
</compile_context>

<pallas_src>
import functools

import jax
import jax.numpy as jnp
from jax import lax
from jax.experimental import pallas as pl
from jax.experimental.pallas import tpu as pltpu

EPS = 1e-5
_VMEM_LIMIT = 32 * 1024 * 1024   # explicit, safe on v5e/v6e/v7x


def _choose_tile_n(n, c, itemsize):
    """Largest row tile <= 1024 keeping one (tile_n, C) block under ~2 MiB.

    tile_n == n (full second-to-last dim) is always layout-legal; otherwise
    tile_n is a multiple of 8.
    """
    if n <= 1024:
        return n
    budget_rows = (2 * 1024 * 1024) // max(1, c * itemsize)
    tile = min(1024, budget_rows)
    tile = max(8, (tile // 8) * 8)
    return tile


def _stats_kernel(x_ref, gamma_ref, beta_ref, gmat_ref,
                  scale_ref, shift_ref,
                  sum_acc, sq_acc,
                  *, n_rows, tile_n, elems_per_group):
    """Accumulate per-channel sum / sumsq; finalize per-channel scale/shift."""
    t = pl.program_id(0)

    @pl.when(t == 0)
    def _init():
        sum_acc[...] = jnp.zeros_like(sum_acc)
        sq_acc[...] = jnp.zeros_like(sq_acc)

    x = x_ref[...].astype(jnp.float32)                      # (tile_n, C)
    if n_rows % tile_n != 0:
        # Mask out-of-range rows of the final (padded) tile.
        row = t * tile_n + lax.broadcasted_iota(jnp.int32, (tile_n, 1), 0)
        x = jnp.where(row < n_rows, x, 0.0)

    sum_acc[...] += jnp.sum(x, axis=0, keepdims=True)        # (1, C)
    sq_acc[...] += jnp.sum(x * x, axis=0, keepdims=True)     # (1, C)

    @pl.when(t == pl.num_programs(0) - 1)
    def _finalize():
        inv_cnt = 1.0 / float(elems_per_group)
        # Group-membership matmul: per-channel -> per-group (broadcast back to
        # channels), avoiding small-shape reshapes inside the kernel.
        gsum = jnp.dot(sum_acc[...], gmat_ref[...],
                       preferred_element_type=jnp.float32)   # (1, C)
        gsq = jnp.dot(sq_acc[...], gmat_ref[...],
                      preferred_element_type=jnp.float32)    # (1, C)
        mean = gsum * inv_cnt
        var = gsq * inv_cnt - mean * mean                    # biased variance
        inv = lax.rsqrt(var + EPS)
        scale = gamma_ref[...] * inv
        scale_ref[...] = scale
        shift_ref[...] = beta_ref[...] - mean * scale


def _apply_kernel(x_ref, scale_ref, shift_ref, o_ref):
    x = x_ref[...].astype(jnp.float32)
    o_ref[...] = (x * scale_ref[...] + shift_ref[...]).astype(o_ref.dtype)


def group_norm(x, gamma, beta, num_groups):
    """x: (N, C); gamma/beta: (C,).  Matches the PyTorch module's forward."""
    n, c = x.shape
    assert c % num_groups == 0
    cg = c // num_groups

    tile_n = _choose_tile_n(n, c, jnp.dtype(x.dtype).itemsize)
    num_tiles = -(-n // tile_n)

    gamma_row = gamma.reshape(1, c).astype(jnp.float32)
    beta_row = beta.reshape(1, c).astype(jnp.float32)
    # (C, C) group-membership matrix: gmat[i, j] = 1 iff channels i, j share a group.
    group_of = jnp.arange(c, dtype=jnp.int32) // cg
    gmat = (group_of[:, None] == group_of[None, :]).astype(jnp.float32)

    stats_kernel = functools.partial(
        _stats_kernel, n_rows=n, tile_n=tile_n, elems_per_group=n * cg)

    # Phase 1: per-channel scale/shift (sequential reduction over row tiles).
    scale, shift = pl.pallas_call(
        stats_kernel,
        out_shape=(jax.ShapeDtypeStruct((1, c), jnp.float32),
                   jax.ShapeDtypeStruct((1, c), jnp.float32)),
        grid_spec=pltpu.PrefetchScalarGridSpec(
            num_scalar_prefetch=0,
            grid=(num_tiles,),
            in_specs=[
                pl.BlockSpec((tile_n, c), lambda t: (t, 0)),   # x tile
                pl.BlockSpec((1, c), lambda t: (0, 0)),        # gamma (resident)
                pl.BlockSpec((1, c), lambda t: (0, 0)),        # beta  (resident)
                pl.BlockSpec((c, c), lambda t: (0, 0)),        # group matrix
            ],
            out_specs=(
                pl.BlockSpec((1, c), lambda t: (0, 0)),
                pl.BlockSpec((1, c), lambda t: (0, 0)),
            ),
            scratch_shapes=[pltpu.VMEM((1, c), jnp.float32),
                            pltpu.VMEM((1, c), jnp.float32)],
        ),
        compiler_params=pltpu.CompilerParams(
            dimension_semantics=("arbitrary",),
            vmem_limit_bytes=_VMEM_LIMIT,
        ),
    )(x, gamma_row, beta_row, gmat)

    # Phase 2: y = x * scale + shift, lane-dense (N, C) tiles, parallel grid.
    y = pl.pallas_call(
        _apply_kernel,
        out_shape=jax.ShapeDtypeStruct((n, c), x.dtype),
        grid_spec=pltpu.PrefetchScalarGridSpec(
            num_scalar_prefetch=0,
            grid=(num_tiles,),
            in_specs=[
                pl.BlockSpec((tile_n, c), lambda t: (t, 0)),
                pl.BlockSpec((1, c), lambda t: (0, 0)),
                pl.BlockSpec((1, c), lambda t: (0, 0)),
            ],
            out_specs=pl.BlockSpec((tile_n, c), lambda t: (t, 0)),
        ),
        compiler_params=pltpu.CompilerParams(
            dimension_semantics=("parallel",),
            vmem_limit_bytes=_VMEM_LIMIT,
        ),
    )(x, scale, shift)

    # Mirrors the trailing .squeeze() in the PyTorch forward (no-op for N>1, C>1).
    return jnp.squeeze(y)


def group_norm_reference(x, gamma, beta, num_groups):
    n, c = x.shape
    g = num_groups
    cg = c // g
    xg = x.reshape(n, g, cg)
    mean = jnp.mean(xg, axis=(0, 2), keepdims=True)
    var = jnp.mean((xg - mean) ** 2, axis=(0, 2), keepdims=True)
    normed = (xg - mean) * lax.rsqrt(var + EPS)
    y = normed.reshape(n, c) * gamma.reshape(1, c) + beta.reshape(1, c)
    return jnp.squeeze(y)


if __name__ == "__main__":
    key = jax.random.PRNGKey(0)
    kx, kg, kb, kx2 = jax.random.split(key, 4)

    # Case 1: KPConv-typical small block (single grid step path).
    num_groups, num_channels, num_points = 4, 32, 16
    x = jax.random.normal(kx, (num_points, num_channels), dtype=jnp.float32)
    # torch.nn.GroupNorm init is weight=1, bias=0; perturb so affine is exercised.
    gamma = jnp.ones((num_channels,), jnp.float32) + 0.1 * jax.random.normal(
        kg, (num_channels,), dtype=jnp.float32)
    beta = 0.1 * jax.random.normal(kb, (num_channels,), dtype=jnp.float32)

    y = jax.block_until_ready(group_norm(x, gamma, beta, num_groups))
    y_ref = group_norm_reference(x, gamma, beta, num_groups)
    assert y.shape == (num_points, num_channels)
    assert jnp.allclose(y, y_ref, atol=1e-5, rtol=1e-5)

    # Case 2: larger point cloud exercising the N-tiled reduction + row masking.
    g2, c2, n2 = 8, 64, 2500
    x2 = jax.random.normal(kx2, (n2, c2), dtype=jnp.float32)
    w2 = jnp.ones((c2,), jnp.float32)
    b2 = jnp.zeros((c2,), jnp.float32)
    y2 = jax.block_until_ready(group_norm(x2, w2, b2, g2))
    y2_ref = group_norm_reference(x2, w2, b2, g2)
    assert y2.shape == (n2, c2)
    assert jnp.allclose(y2, y2_ref, atol=2e-4, rtol=2e-4)

    print("KERNEL_OK")
</pallas_src>

<mosaic_0001>
module attributes {stable_mosaic.version = 11 : i64} {
  func.func @_stats_kernel(%arg0: i32, %arg1: memref<16x32xf32, #tpu.memory_space<vmem>>, %arg2: memref<1x32xf32, #tpu.memory_space<vmem>>, %arg3: memref<1x32xf32, #tpu.memory_space<vmem>>, %arg4: memref<32x32xf32, #tpu.memory_space<vmem>>, %arg5: memref<1x32xf32, #tpu.memory_space<vmem>>, %arg6: memref<1x32xf32, #tpu.memory_space<vmem>>, %arg7: memref<1x32xf32, #tpu.memory_space<vmem>>, %arg8: memref<1x32xf32, #tpu.memory_space<vmem>>) attributes {dimension_semantics = [#tpu.dimension_semantics<arbitrary>], iteration_bounds = array<i64: 1>, scalar_prefetch = 0 : i64, scratch_operands = 2 : i64, tpu.core_type = #tpu.core_type<tc>, window_params = [{transform_indices = @transform_0, window_bounds = array<i64: 16, 32>}, {pipeline_mode = #tpu.pipeline_mode<synchronous>, transform_indices = @transform_1, window_bounds = array<i64: 1, 32>}, {pipeline_mode = #tpu.pipeline_mode<synchronous>, transform_indices = @transform_2, window_bounds = array<i64: 1, 32>}, {pipeline_mode = #tpu.pipeline_mode<synchronous>, transform_indices = @transform_3, window_bounds = array<i64: 32, 32>}, {pipeline_mode = #tpu.pipeline_mode<synchronous>, transform_indices = @transform_4, window_bounds = array<i64: 1, 32>}, {pipeline_mode = #tpu.pipeline_mode<synchronous>, transform_indices = @transform_5, window_bounds = array<i64: 1, 32>}]} {
    %c0_i32 = arith.constant 0 : i32
    %0 = arith.cmpi eq, %arg0, %c0_i32 : i32
    %1 = arith.extui %0 : i1 to i32
    %c0_i32_0 = arith.constant 0 : i32
    %2 = arith.cmpi ne, %1, %c0_i32_0 : i32
    scf.if %2 {
      %cst_13 = arith.constant 0.000000e+00 : f32
      %18 = vector.broadcast %cst_13 : f32 to vector<1x32xf32>
      %c0_14 = arith.constant 0 : index
      %c0_15 = arith.constant 0 : index
      %19 = vector.load %arg7[%c0_14, %c0_15] : memref<1x32xf32, #tpu.memory_space<vmem>>, vector<1x32xf32>
      tpu.vector_store %arg7[%c0_14, %c0_15], %18 {strides = array<i32>} : memref<1x32xf32, #tpu.memory_space<vmem>>, vector<1x32xf32>,
      %cst_16 = arith.constant 0.000000e+00 : f32
      %20 = vector.broadcast %cst_16 : f32 to vector<1x32xf32>
      %c0_17 = arith.constant 0 : index
      %c0_18 = arith.constant 0 : index
      %21 = vector.load %arg8[%c0_17, %c0_18] : memref<1x32xf32, #tpu.memory_space<vmem>>, vector<1x32xf32>
      tpu.vector_store %arg8[%c0_17, %c0_18], %20 {strides = array<i32>} : memref<1x32xf32, #tpu.memory_space<vmem>>, vector<1x32xf32>,
    } else {
    }
    %c0 = arith.constant 0 : index
    %c0_1 = arith.constant 0 : index
    %3 = vector.load %arg1[%c0, %c0_1] : memref<16x32xf32, #tpu.memory_space<vmem>>, vector<16x32xf32>
    %c0_2 = arith.constant 0 : index
    %c0_3 = arith.constant 0 : index
    %4 = vector.load %arg7[%c0_2, %c0_3] : memref<1x32xf32, #tpu.memory_space<vmem>>, vector<1x32xf32>
    %cst = arith.constant dense<0.000000e+00> : vector<32xf32>
    %5 = vector.multi_reduction <add>, %3, %cst [0] : vector<16x32xf32> to vector<32xf32>
    %6 = vector.shape_cast %5 : vector<32xf32> to vector<1x32xf32>
    %7 = arith.addf %4, %6 : vector<1x32xf32>
    %c0_4 = arith.constant 0 : index
    %c0_5 = arith.constant 0 : index
    %8 = vector.load %arg7[%c0_4, %c0_5] : memref<1x32xf32, #tpu.memory_space<vmem>>, vector<1x32xf32>
    tpu.vector_store %arg7[%c0_4, %c0_5], %7 {strides = array<i32>} : memref<1x32xf32, #tpu.memory_space<vmem>>, vector<1x32xf32>,
    %c0_6 = arith.constant 0 : index
    %c0_7 = arith.constant 0 : index
    %9 = vector.load %arg8[%c0_6, %c0_7] : memref<1x32xf32, #tpu.memory_space<vmem>>, vector<1x32xf32>
    %10 = arith.mulf %3, %3 : vector<16x32xf32>
    %cst_8 = arith.constant dense<0.000000e+00> : vector<32xf32>
    %11 = vector.multi_reduction <add>, %10, %cst_8 [0] : vector<16x32xf32> to vector<32xf32>
    %12 = vector.shape_cast %11 : vector<32xf32> to vector<1x32xf32>
    %13 = arith.addf %9, %12 : vector<1x32xf32>
    %c0_9 = arith.constant 0 : index
    %c0_10 = arith.constant 0 : index
    %14 = vector.load %arg8[%c0_9, %c0_10] : memref<1x32xf32, #tpu.memory_space<vmem>>, vector<1x32xf32>
    tpu.vector_store %arg8[%c0_9, %c0_10], %13 {strides = array<i32>} : memref<1x32xf32, #tpu.memory_space<vmem>>, vector<1x32xf32>,
    %c0_i32_11 = arith.constant 0 : i32
    %15 = arith.cmpi eq, %arg0, %c0_i32_11 : i32
    %16 = arith.extui %15 : i1 to i32
    %c0_i32_12 = arith.constant 0 : i32
    %17 = arith.cmpi ne, %16, %c0_i32_12 : i32
    scf.if %17 {
      %c0_13 = arith.constant 0 : index
      %c0_14 = arith.constant 0 : index
      %18 = vector.load %arg7[%c0_13, %c0_14] : memref<1x32xf32, #tpu.memory_space<vmem>>, vector<1x32xf32>
      %c0_15 = arith.constant 0 : index
      %c0_16 = arith.constant 0 : index
      %19 = vector.load %arg4[%c0_15, %c0_16] : memref<32x32xf32, #tpu.memory_space<vmem>>, vector<32x32xf32>
      %cst_17 = arith.constant dense<0.000000e+00> : vector<1x32xf32>
      %20 = tpu.matmul %18, %19, %cst_17 {dimension_numbers = #tpu.dot_dimension_numbers<[1], [0], [0], [1], [0, 0, 1, 1], [], []>} : vector<1x32xf32>, vector<32x32xf32>, vector<1x32xf32> -> vector<1x32xf32>
      %c0_18 = arith.constant 0 : index
      %c0_19 = arith.constant 0 : index
      %21 = vector.load %arg8[%c0_18, %c0_19] : memref<1x32xf32, #tpu.memory_space<vmem>>, vector<1x32xf32>
      %c0_20 = arith.constant 0 : index
      %c0_21 = arith.constant 0 : index
      %22 = vector.load %arg4[%c0_20, %c0_21] : memref<32x32xf32, #tpu.memory_space<vmem>>, vector<32x32xf32>
      %cst_22 = arith.constant dense<0.000000e+00> : vector<1x32xf32>
      %23 = tpu.matmul %21, %22, %cst_22 {dimension_numbers = #tpu.dot_dimension_numbers<[1], [0], [0], [1], [0, 0, 1, 1], [], []>} : vector<1x32xf32>, vector<32x32xf32>, vector<1x32xf32> -> vector<1x32xf32>
      %cst_23 = arith.constant 7.812500e-03 : f32
      %24 = vector.broadcast %cst_23 : f32 to vector<1x32xf32>
      %25 = arith.mulf %20, %24 : vector<1x32xf32>
      %cst_24 = arith.constant 7.812500e-03 : f32
      %26 = vector.broadcast %cst_24 : f32 to vector<1x32xf32>
      %27 = arith.mulf %23, %26 : vector<1x32xf32>
      %28 = arith.mulf %25, %25 : vector<1x32xf32>
      %29 = arith.subf %27, %28 : vector<1x32xf32>
      %cst_25 = arith.constant 9.99999974E-6 : f32
      %30 = vector.broadcast %cst_25 : f32 to vector<1x32xf32>
      %31 = arith.addf %29, %30 : vector<1x32xf32>
      %32 = math.rsqrt %31 : vector<1x32xf32>
      %c0_26 = arith.constant 0 : index
      %c0_27 = arith.constant 0 : index
      %33 = vector.load %arg2[%c0_26, %c0_27] : memref<1x32xf32, #tpu.memory_space<vmem>>, vector<1x32xf32>
      %34 = arith.mulf %33, %32 : vector<1x32xf32>
      %c0_28 = arith.constant 0 : index
      %c0_29 = arith.constant 0 : index
      %35 = vector.load %arg5[%c0_28, %c0_29] : memref<1x32xf32, #tpu.memory_space<vmem>>, vector<1x32xf32>
      tpu.vector_store %arg5[%c0_28, %c0_29], %34 {strides = array<i32>} : memref<1x32xf32, #tpu.memory_space<vmem>>, vector<1x32xf32>,
      %c0_30 = arith.constant 0 : index
      %c0_31 = arith.constant 0 : index
      %36 = vector.load %arg3[%c0_30, %c0_31] : memref<1x32xf32, #tpu.memory_space<vmem>>, vector<1x32xf32>
      %37 = arith.mulf %25, %34 : vector<1x32xf32>
      %38 = arith.subf %36, %37 : vector<1x32xf32>
      %c0_32 = arith.constant 0 : index
      %c0_33 = arith.constant 0 : index
      %39 = vector.load %arg6[%c0_32, %c0_33] : memref<1x32xf32, #tpu.memory_space<vmem>>, vector<1x32xf32>
      tpu.vector_store %arg6[%c0_32, %c0_33], %38 {strides = array<i32>} : memref<1x32xf32, #tpu.memory_space<vmem>>, vector<1x32xf32>,
    } else {
    }
    return
  }
  func.func @transform_0(%arg0: i32) -> (i32, i32) {
    %c0_i32 = arith.constant 0 : i32
    %c0_i32_0 = arith.constant 0 : i32
    return %arg0, %c0_i32 : i32, i32
  }
  func.func @transform_1(%arg0: i32) -> (i32, i32) {
    %c0_i32 = arith.constant 0 : i32
    %c0_i32_0 = arith.constant 0 : i32
    %c0_i32_1 = arith.constant 0 : i32
    return %c0_i32, %c0_i32_0 : i32, i32
  }
  func.func @transform_2(%arg0: i32) -> (i32, i32) {
    %c0_i32 = arith.constant 0 : i32
    %c0_i32_0 = arith.constant 0 : i32
    %c0_i32_1 = arith.constant 0 : i32
    return %c0_i32, %c0_i32_0 : i32, i32
  }
  func.func @transform_3(%arg0: i32) -> (i32, i32) {
    %c0_i32 = arith.constant 0 : i32
    %c0_i32_0 = arith.constant 0 : i32
    %c0_i32_1 = arith.constant 0 : i32
    return %c0_i32, %c0_i32_0 : i32, i32
  }
  func.func @transform_4(%arg0: i32) -> (i32, i32) {
    %c0_i32 = arith.constant 0 : i32
    %c0_i32_0 = arith.constant 0 : i32
    %c0_i32_1 = arith.constant 0 : i32
    return %c0_i32, %c0_i32_0 : i32, i32
  }
  func.func @transform_5(%arg0: i32) -> (i32, i32) {
    %c0_i32 = arith.constant 0 : i32
    %c0_i32_0 = arith.constant 0 : i32
    %c0_i32_1 = arith.constant 0 : i32
    return %c0_i32, %c0_i32_0 : i32, i32
  }
}

</mosaic_0001>

<bundles_post_ra>
// kernel: tpu_custom_call.1
= control target key start
LH: loop header
LB: loop body
LE: loop exit
PB: predicated region body
PF: predicated region fallthrough
CT: control target
= control target key end

     0   :  { %11 = vsyncpa [#allocation5], 0  ;;  %s484_s0 = inlined_call_operand.hbm [shape: f32[16,32], index: 0, kind: input, shape index: {}]   ;;  %s485_s1 = inlined_call_operand.vmem [shape: f32[1,32], index: 1, kind: input, shape index: {}]   ;;  %s486_s2 = inlined_call_operand.vmem [shape: f32[1,32], index: 2, kind: input, shape index: {}]   ;;  %s487_s3 = inlined_call_operand.hbm [shape: f32[32,32], index: 3, kind: input, shape index: {}]   ;;  %s488_s4 = inlined_call_operand.hbm [shape: f32[1,32], index: 4, kind: output, shape index: {0}]   ;;  %s489_s5 = inlined_call_operand.hbm [shape: f32[1,32], index: 5, kind: output, shape index: {1}]  }
   0x1   :  { %12 = vsyncpa [#allocation8], 0 }
   0x2   :  { %13 = vsyncpa [#allocation6], 0 }
   0x3   :  { %14 = vsyncpa [#allocation11], 0  ;;  %s416_s18 = smov [#allocation4]  }
   0x4   :  { %s20_s19 = sshll.u32 %s416_s18, 4  ;;  %s21_s19 = int_to_ptr.vmem [resolvable:$true] %s20_s19 }
   0x5   :  { %s336_s20 = scalar_lea.vmem %s21_s19, 256  ;;  %p341_p1 = scmp.lt.s32.totalorder %s21_s19, %s21_s19 }
   0x6   :  { %p337_p0 = scmp.ne.s32.totalorder %s21_s19, %s336_s20  ;;  %p342_p2 = scmp.lt.s32.totalorder %s336_s20, %s336_s20 }
   0x8   :  { %p343_p3 = por %p342_p2, %p341_p1 }
   0xa   :  { %p344_p4 = pnand %p343_p3, %p337_p0 }
   0xc   :  { %347 = shalt.err (!%p344_p4)
}
   0xd   :  { %s417_s21 = smov 128   ;;  %s418_s22 = smov 8  }
   0xe   :  { %26 = dma.hbm_to_vmem [thread:$0]  %s484_s0, 256, %s21_s19, [#allocation5], %s417_s21, %s417_s21, %s418_s22  }
   0xf   :  { %s419_s25 = smov [#allocation7]  }
  0x10   :  { %s36_s26 = sshll.u32 %s419_s25, 4  ;;  %s37_s26 = int_to_ptr.vmem [resolvable:$true] %s36_s26 }
  0x11   :  { %s356_s27 = scalar_lea.vmem %s37_s26, 512  ;;  %p361_p6 = scmp.lt.s32.totalorder %s37_s26, %s37_s26 }
  0x12   :  { %p357_p5 = scmp.ne.s32.totalorder %s37_s26, %s356_s27  ;;  %p362_p7 = scmp.lt.s32.totalorder %s356_s27, %s356_s27 }
  0x14   :  { %p363_p8 = por %p362_p7, %p361_p6 }
  0x16   :  { %p364_p9 = pnand %p363_p8, %p357_p5 }
  0x18   :  { %367 = shalt.err (!%p364_p9)
}
  0x19   :  { %42 = dma.hbm_to_vmem [thread:$0]  %s487_s3, 512, %s37_s26, [#allocation8], %s417_s21, %s417_s21, %s418_s22  }
  0x1a   :  { %408 = dma.done.wait [#allocation5], 256  }
  0x1b   :  { %409 = vsyncadd [#allocation5], 4294967040 }
  0x1c   :  { %410 = dma.done.wait [#allocation8], 512  }
  0x1d   :  { %411 = vsyncadd [#allocation8], 4294966784  ;;  %vm53_vm0 = vcmask 253952   ;;  %v420_v0 = vmov 0.0   ;;  %vm421_vm1 = vmmov 0   ;;  %vm59_vm2 = vcmask 261120  }
  0x1e   :  { %296 = vmatprep.subr.mxu0 %v420_v0  ;;  %307 = vmatprep.subr.mxu1 %v420_v0  ;;  %54 = vst.msk [vmem:[#allocation2] sm:$0x1] %vm53_vm0, %v420_v0  ;;  %55 = vst.msk [vmem:[#allocation3] sm:$0x1] %vm53_vm0, %v420_v0  ;;  %v93_v1 = vld [vmem:[#allocation7 + $0x18] sm:$0xff]  ;;  %v92_v2 = vld [vmem:[#allocation7 + $0x10] sm:$0xff] }
  0x1f   :  { %304 = vmatprep.mubr.msk.f32.mxu0 %vm421_vm1, %v420_v0  ;;  %315 = vmatprep.mubr.msk.f32.mxu1 %vm421_vm1, %v420_v0  ;;  %v56_v3 = vld [vmem:[#allocation4] sm:$0xff]  ;;  %v57_v4 = vld [vmem:[#allocation4 + $0x8] sm:$0xff]  ;;  %v91_v5 = vld [vmem:[#allocation7 + $0x8] sm:$0xff]  ;;  %s422_s30 = smov [#allocation9]   ;;  %s423_s9 = smov [#allocation10]  }
  0x20   :  { %297 = vmatpush3.msra.mxu0 %v93_v1  ;;  %308 = vmatpush3.msra.mxu1 %v93_v1  ;;  %v60_v6 = vsel %vm59_vm2, %v56_v3, 0.0  ;;  %v61_v7 = vsel %vm59_vm2, %v57_v4, 0.0  ;;  %v73_v8 = vmul.f32 %v56_v3, %v56_v3  ;;  %v74_v9 = vmul.f32 %v57_v4, %v57_v4  ;;  %v90_v11 = vld [vmem:[#allocation7] sm:$0xff]  ;;  %v247_v42 = vld [vmem:[%s485_s1] sm:$0x1]  ;;  %s260_s6 = sshll.u32 %s422_s30, 4  ;;  %s261_s6 = int_to_ptr.vmem [resolvable:$true] %s260_s6 }
  0x21   :  { %298 = vmatprep.subr.mxu0 %v420_v0  ;;  %309 = vmatprep.subr.mxu1 %v420_v0  ;;  %v62_v10 = vadd.f32 %v61_v7, %v60_v6  ;;  %v250_v45 = vld [vmem:[%s486_s2] sm:$0x1]  ;;  %s270_s10 = sshll.u32 %s423_s9, 4  ;;  %s368_s11 = scalar_lea.vmem %s261_s6, 16  ;;  %s271_s10 = int_to_ptr.vmem [resolvable:$true] %s270_s10 }
  0x22   :  { %299 = vmatpush3.msra.mxu0 %v92_v2  ;;  %310 = vmatpush3.msra.mxu1 %v92_v2  ;;  %v75_v12 = vsel %vm59_vm2, %v73_v8, 0.0  ;;  %v76_v13 = vsel %vm59_vm2, %v74_v9, 0.0  ;;  %p369_p10 = scmp.ne.s32.totalorder %s261_s6, %s368_s11  ;;  %s372_s12 = scalar_lea.vmem %s261_s6, 32 }
  0x23   :  { %300 = vmatprep.subr.mxu0 %v420_v0  ;;  %311 = vmatprep.subr.mxu1 %v420_v0  ;;  %v63_v14 = vrot.slane %v62_v10, 4  ;;  %v77_v15 = vadd.f32 %v76_v13, %v75_v12  ;;  %p373_p11 = scmp.lt.s32.totalorder %s261_s6, %s261_s6  ;;  %p374_p12 = scmp.lt.s32.totalorder %s372_s12, %s368_s11 }
  0x24   :  { %301 = vmatpush3.msra.mxu0 %v91_v5  ;;  %312 = vmatpush3.msra.mxu1 %v91_v5 }
  0x25   :  { %302 = vmatprep.subr.mxu0 %v420_v0  ;;  %313 = vmatprep.subr.mxu1 %v420_v0  ;;  %v64_v16 = vadd.f32 %v63_v14, %v62_v10  ;;  %v78_v17 = vrot.slane %v77_v15, 4  ;;  %v58_v24 = vld [vmem:[#allocation2] sm:$0x1]  ;;  %v72_v27 = vld [vmem:[#allocation3] sm:$0x1]  ;;  %p375_p13 = por %p374_p12, %p373_p11 }
  0x26   :  { %303 = vmatpush3.msra.mxu0 %v90_v11  ;;  %314 = vmatpush3.msra.mxu1 %v90_v11 }
  0x27   :  { %v65_v18 = vrot.slane %v64_v16, 2  ;;  %v79_v19 = vadd.f32 %v78_v17, %v77_v15  ;;  %p376_p0 = pnand %p375_p13, %p369_p10 }
  0x29   :  { %v66_v20 = vadd.f32 %v65_v18, %v64_v16  ;;  %v80_v21 = vrot.slane %v79_v19, 2 }
  0x2b   :  { %v67_v22 = vrot.slane %v66_v20, 1  ;;  %v81_v23 = vadd.f32 %v80_v21, %v79_v19 }
  0x2d   :  { %v68_v25 = vadd.f32 %v67_v22, %v66_v20  ;;  %v82_v26 = vrot.slane %v81_v23, 1 }
  0x2f   :  { %v69_v28 = vadd.f32 %v68_v25, %v58_v24  ;;  %v83_v29 = vadd.f32 %v82_v26, %v81_v23 }
  0x31   :  { %71 = vst.msk [vmem:[#allocation2] sm:$0x1] %vm53_vm0, %v69_v28  ;;  %v84_v30 = vadd.f32 %v83_v29, %v72_v27 }
  0x33   :  { %85 = vst.msk [vmem:[#allocation3] sm:$0x1] %vm53_vm0, %v84_v30 }
  0x38   :  { %v89_v31 = vld [vmem:[#allocation2] sm:$0x1] }
  0x39   :  { %305 = vmatmul.mubr.msk.f32.vlgmr.msra.gmra.mxu0 %vm59_vm2, %v89_v31 }
  0x3a   :  { %v167_v32 = vld [vmem:[#allocation3] sm:$0x1] }
  0x3b   :  { %316 = vmatmul.mubr.msk.f32.vlgmr.msra.gmra.mxu1 %vm59_vm2, %v167_v32 }
  0xf9   :  { %v163_v33 = vpop.f32.mrf.mxu0 }
  0xfa   :  { %v241_v34 = vmul.f32 0.0078125, %v163_v33 }
  0xfb   :  { %v306_v35 = vpop.f32.mrf.mxu0  ;;  %v237_v36 = vpop.f32.mrf.mxu1 }
  0xfc   :  { %v243_v37 = vmul.f32 %v241_v34, %v241_v34  ;;  %v242_v38 = vmul.f32 0.0078125, %v237_v36 }
  0xfd   :  { %v317_v39 = vpop.f32.mrf.mxu1 }
  0xfe   :  { %v244_v40 = vsub.f32 %v242_v38, %v243_v37 }
 0x100   :  { %v245_v41 = vadd.f32 1e-05, %v244_v40 }
 0x102   :  { %326 = vrsqrt.f32 %v245_v41 }
 0x10f   :  { %v327_v43 = vpop.eup %326 }
 0x110   :  { %v248_v44 = vmul.f32 %v327_v43, %v247_v42 }
 0x112   :  { %249 = vst.msk [vmem:[#allocation9] sm:$0x1] %vm53_vm0, %v248_v44  ;;  %v251_v46 = vmul.f32 %v248_v44, %v241_v34 }
 0x113   :  { %379 = shalt.err (!%p376_p0)
}
 0x114   :  { %263 = dma.vmem_to_hbm [thread:$0]  %s261_s6, 16, %s488_s4, [#allocation6]   ;;  %v252_v47 = vsub.f32 %v250_v45, %v251_v46 }
 0x115   :  { %s388_s2 = scalar_lea.vmem %s271_s10, 16  ;;  %s392_s14 = scalar_lea.vmem %s271_s10, 32 }
 0x116   :  { %253 = vst.msk [vmem:[#allocation10] sm:$0x1] %vm53_vm0, %v252_v47  ;;  %p389_p1 = scmp.ne.s32.totalorder %s271_s10, %s388_s2  ;;  %p393_p2 = scmp.lt.s32.totalorder %s271_s10, %s271_s10 }
 0x117   :  { %p394_p3 = scmp.lt.s32.totalorder %s392_s14, %s388_s2 }
 0x119   :  { %p395_p4 = por %p394_p3, %p393_p2 }
 0x11b   :  { %p396_p5 = pnand %p395_p4, %p389_p1 }
 0x11d   :  { %399 = shalt.err (!%p396_p5)
}
 0x11e   :  { %273 = dma.vmem_to_hbm [thread:$0]  %s271_s10, 16, %s489_s5, [#allocation11]  }
 0x11f   :  { %412 = dma.done.wait [#allocation6], 16  }
 0x120   :  { %413 = vsyncadd [#allocation6], 4294967280 }
 0x121   :  { %414 = dma.done.wait [#allocation11], 16  }
 0x122   :  { %415 = vsyncadd [#allocation11], 4294967280 }
 0x123   :  { %280 = vsyncpa [#allocation5], 1 }
 0x124   :  { %281 = vsyncpa [#allocation8], 1 }
 0x125   :  { %282 = vsyncpa [#allocation6], 1 }
 0x126   :  { %283 = vsyncpa [#allocation11], 1 }

</bundles_post_ra>
